<compile_context>
chip_gen: v5e
topology: v5e:2x2
jax: 0.10.0
libtpu: 0.0.40
codegen_flags: <defaults>
</compile_context>

<pallas_src>
import jax
import jax.numpy as jnp
from jax.experimental import pallas as pl
from jax.experimental.pallas import tpu as pltpu

INPUT_SIZE = 28
IN_PAD = 32        # input feature dim zero-padded 28 -> 32 (aligned rows)
HIDDEN = 64
NUM_CLASSES = 10
OUT_PAD = 128      # classifier output padded to a full 128-lane (unmasked) store


def _reorder_and_prescale(a):
    """Gate axis (..., 4H): PyTorch order (i,f,g,o) -> (i,f,o,g), with the
    i/f/o columns pre-scaled by 0.5 so the kernel can use the exact identity
    sigmoid(z) = 0.5 * tanh(z/2) + 0.5 with a single tanh over all 4H lanes."""
    i, f, g, o = jnp.split(a, 4, axis=-1)
    return jnp.concatenate([0.5 * i, 0.5 * f, 0.5 * o, g], axis=-1)


def _lstm_head_kernel(x_ref, wih_ref, whh_ref, b_ref, wout_ref, bout_ref,
                      out_ref, gx_scr):
    bt = out_ref.shape[0]          # batch rows in this tile
    T = x_ref.shape[0] // bt       # timesteps
    H = HIDDEN

    # Phase 1: input projection + fused bias for ALL timesteps of this batch
    # tile in one MXU pass (off the recurrent critical path).
    gx_scr[...] = (
        jnp.dot(x_ref[...], wih_ref[...], preferred_element_type=jnp.float32)
        + b_ref[...])

    # Phase 2: latency-bound recurrence -- only h @ W_hh^T per step.
    def step(t, hc):
        h, c = hc
        row = pl.multiple_of(t * bt, bt)   # sublane-aligned slice start
        # W_hh read from VMEM every step on purpose (reload is hidden by vld
        # slots; keeping it in vregs across the unrolled loop risks spills).
        gates = gx_scr[pl.ds(row, bt), :] + jnp.dot(
            h, whh_ref[...], preferred_element_type=jnp.float32)
        # Single transcendental per step: tanh over the whole (bt, 4H) tile.
        tg = jnp.tanh(gates)
        sig = 0.5 * tg[:, :3 * H] + 0.5    # sigmoid(i,f,o) via tanh identity
        i_g = sig[:, 0:H]
        f_g = sig[:, H:2 * H]
        o_g = sig[:, 2 * H:3 * H]
        g_g = tg[:, 3 * H:]
        c_new = f_g * c + i_g * g_g
        h_new = o_g * jnp.tanh(c_new)
        return (h_new, c_new)

    h0 = jnp.zeros((bt, H), jnp.float32)
    c0 = jnp.zeros((bt, H), jnp.float32)
    h_last, _ = jax.lax.fori_loop(0, T, step, (h0, c0), unroll=True)

    # Fused classifier head on the last hidden state (lane-dense 128-wide store).
    out_ref[...] = (
        jnp.dot(h_last, wout_ref[...], preferred_element_type=jnp.float32)
        + bout_ref[...]).astype(out_ref.dtype)


def rnn_forward(x, params, *, batch_tile=None):
    """x: (B, T, INPUT_SIZE) batch-first, like the PyTorch module. Returns (B, 10).

    batch_tile: batch rows per grid program (multiple of 8, divides B).
    Default = B (grid of 1).  On v7x, batch_tile = B // 2 shards the batch
    across both TensorCores via the "parallel" grid axis."""
    w_ih, w_hh, b_ih, b_hh, w_out, b_out = params
    B, T, _ = x.shape
    H = HIDDEN
    G = 4 * H

    bt = B if batch_tile is None else batch_tile
    assert B % bt == 0 and (bt % 8 == 0 or bt == B), \
        "batch_tile must divide B and be a multiple of 8"
    n_tiles = B // bt

    # Zero-pad features 28 -> 32, then arrange rows as (tile, time, batch-in-tile)
    # so each grid program gets a contiguous (T*bt, IN_PAD) slab, time-major.
    x_pad = jnp.pad(x, ((0, 0), (0, 0), (0, IN_PAD - INPUT_SIZE)))
    x_tiles = (x_pad.reshape(n_tiles, bt, T, IN_PAD)
               .transpose(0, 2, 1, 3)
               .reshape(n_tiles * T * bt, IN_PAD))

    # Transposed weights: gate cols reordered (i,f,g,o)->(i,f,o,g) and i/f/o
    # columns pre-scaled by 0.5 (see _reorder_and_prescale). W_ih rows padded
    # to 32 with zeros so the padded x columns contribute nothing.
    wih_t = jnp.zeros((IN_PAD, G), jnp.float32).at[:INPUT_SIZE, :].set(
        _reorder_and_prescale(jnp.transpose(w_ih, (1, 0))))
    whh_t = _reorder_and_prescale(jnp.transpose(w_hh, (1, 0)))
    b_all = _reorder_and_prescale((b_ih + b_hh).reshape(1, G))

    # Lane-dense classifier head: pad N=10 -> 128 lanes (unmasked vst).
    wout_pad = jnp.zeros((H, OUT_PAD), jnp.float32).at[:, :NUM_CLASSES].set(
        jnp.transpose(w_out, (1, 0)))
    bout_pad = jnp.zeros((1, OUT_PAD), jnp.float32).at[0, :NUM_CLASSES].set(b_out)

    out_padded = pl.pallas_call(
        _lstm_head_kernel,
        out_shape=jax.ShapeDtypeStruct((B, OUT_PAD), jnp.float32),
        grid=(n_tiles,),
        in_specs=[
            pl.BlockSpec((T * bt, IN_PAD), lambda b: (b, 0)),   # x (this batch tile)
            pl.BlockSpec((IN_PAD, G), lambda b: (0, 0)),        # W_ih^T (padded/reordered/scaled)
            pl.BlockSpec((H, G), lambda b: (0, 0)),             # W_hh^T (reordered/scaled)
            pl.BlockSpec((1, G), lambda b: (0, 0)),             # fused bias
            pl.BlockSpec((H, OUT_PAD), lambda b: (0, 0)),       # W_out^T (padded)
            pl.BlockSpec((1, OUT_PAD), lambda b: (0, 0)),       # b_out (padded)
        ],
        out_specs=pl.BlockSpec((bt, OUT_PAD), lambda b: (b, 0)),
        scratch_shapes=[
            pltpu.VMEM((T * bt, G), jnp.float32),               # precomputed x-gates
        ],
        compiler_params=pltpu.CompilerParams(
            dimension_semantics=("parallel",)),                 # v7x: split tiles across 2 TCs
    )(x_tiles, wih_t, whh_t, b_all, wout_pad, bout_pad)

    return out_padded[:, :NUM_CLASSES]


def init_params(key):
    """Deterministic init matching PyTorch LSTM / Linear parameter shapes."""
    ks = jax.random.split(key, 6)
    s_lstm = 1.0 / jnp.sqrt(HIDDEN)
    s_lin = 1.0 / jnp.sqrt(HIDDEN)
    w_ih = jax.random.uniform(ks[0], (4 * HIDDEN, INPUT_SIZE), jnp.float32, -s_lstm, s_lstm)
    w_hh = jax.random.uniform(ks[1], (4 * HIDDEN, HIDDEN), jnp.float32, -s_lstm, s_lstm)
    b_ih = jax.random.uniform(ks[2], (4 * HIDDEN,), jnp.float32, -s_lstm, s_lstm)
    b_hh = jax.random.uniform(ks[3], (4 * HIDDEN,), jnp.float32, -s_lstm, s_lstm)
    w_out = jax.random.uniform(ks[4], (NUM_CLASSES, HIDDEN), jnp.float32, -s_lin, s_lin)
    b_out = jax.random.uniform(ks[5], (NUM_CLASSES,), jnp.float32, -s_lin, s_lin)
    return (w_ih, w_hh, b_ih, b_hh, w_out, b_out)


def rnn_forward_reference(x, params):
    """Pure-JAX reference (PyTorch gate order / math), for correctness checking."""
    w_ih, w_hh, b_ih, b_hh, w_out, b_out = params
    B, T, _ = x.shape
    h = jnp.zeros((B, HIDDEN), jnp.float32)
    c = jnp.zeros((B, HIDDEN), jnp.float32)
    for t in range(T):
        gates = x[:, t, :] @ w_ih.T + b_ih + h @ w_hh.T + b_hh
        i_g = jax.nn.sigmoid(gates[:, 0 * HIDDEN:1 * HIDDEN])
        f_g = jax.nn.sigmoid(gates[:, 1 * HIDDEN:2 * HIDDEN])
        g_g = jnp.tanh(gates[:, 2 * HIDDEN:3 * HIDDEN])
        o_g = jax.nn.sigmoid(gates[:, 3 * HIDDEN:4 * HIDDEN])
        c = f_g * c + i_g * g_g
        h = o_g * jnp.tanh(c)
    return h @ w_out.T + b_out


if __name__ == "__main__":
    key = jax.random.PRNGKey(0)
    k_x, k_x2, k_p = jax.random.split(key, 3)
    params = init_params(k_p)

    # Small shapes consistent with the module (feature dim fixed at 28).
    B, T = 8, 8
    x = jax.random.normal(k_x, (B, T, INPUT_SIZE), jnp.float32)

    out = jax.block_until_ready(rnn_forward(x, params))
    ref = rnn_forward_reference(x, params)
    assert out.shape == (B, NUM_CLASSES)
    assert jnp.allclose(out, ref, atol=1e-4, rtol=1e-4)

    # Multi-tile path: "parallel" batch grid (uses both TensorCores on v7x).
    B2 = 16
    x2 = jax.random.normal(k_x2, (B2, T, INPUT_SIZE), jnp.float32)
    out2 = jax.block_until_ready(rnn_forward(x2, params, batch_tile=8))
    ref2 = rnn_forward_reference(x2, params)
    assert out2.shape == (B2, NUM_CLASSES)
    assert jnp.allclose(out2, ref2, atol=1e-4, rtol=1e-4)

    print("KERNEL_OK")
</pallas_src>

<mosaic_0001>
module attributes {stable_mosaic.version = 11 : i64} {
  func.func @_lstm_head_kernel(%arg0: i32, %arg1: memref<64x32xf32, #tpu.memory_space<vmem>>, %arg2: memref<32x256xf32, #tpu.memory_space<vmem>>, %arg3: memref<64x256xf32, #tpu.memory_space<vmem>>, %arg4: memref<1x256xf32, #tpu.memory_space<vmem>>, %arg5: memref<64x128xf32, #tpu.memory_space<vmem>>, %arg6: memref<1x128xf32, #tpu.memory_space<vmem>>, %arg7: memref<8x128xf32, #tpu.memory_space<vmem>>, %arg8: memref<64x256xf32, #tpu.memory_space<vmem>>) attributes {dimension_semantics = [#tpu.dimension_semantics<parallel>], iteration_bounds = array<i64: 1>, scalar_prefetch = 0 : i64, scratch_operands = 1 : i64, tpu.core_type = #tpu.core_type<tc>, window_params = [{transform_indices = @transform_0, window_bounds = array<i64: 64, 32>}, {pipeline_mode = #tpu.pipeline_mode<synchronous>, transform_indices = @transform_1, window_bounds = array<i64: 32, 256>}, {pipeline_mode = #tpu.pipeline_mode<synchronous>, transform_indices = @transform_2, window_bounds = array<i64: 64, 256>}, {pipeline_mode = #tpu.pipeline_mode<synchronous>, transform_indices = @transform_3, window_bounds = array<i64: 1, 256>}, {pipeline_mode = #tpu.pipeline_mode<synchronous>, transform_indices = @transform_4, window_bounds = array<i64: 64, 128>}, {pipeline_mode = #tpu.pipeline_mode<synchronous>, transform_indices = @transform_5, window_bounds = array<i64: 1, 128>}, {transform_indices = @transform_6, window_bounds = array<i64: 8, 128>}]} {
    %c0 = arith.constant 0 : index
    %c0_0 = arith.constant 0 : index
    %0 = vector.load %arg1[%c0, %c0_0] : memref<64x32xf32, #tpu.memory_space<vmem>>, vector<64x32xf32>
    %c0_1 = arith.constant 0 : index
    %c0_2 = arith.constant 0 : index
    %1 = vector.load %arg2[%c0_1, %c0_2] : memref<32x256xf32, #tpu.memory_space<vmem>>, vector<32x256xf32>
    %cst = arith.constant dense<0.000000e+00> : vector<64x256xf32>
    %2 = tpu.matmul %0, %1, %cst {dimension_numbers = #tpu.dot_dimension_numbers<[1], [0], [0], [1], [0, 0, 1, 1], [], []>} : vector<64x32xf32>, vector<32x256xf32>, vector<64x256xf32> -> vector<64x256xf32>
    %c0_3 = arith.constant 0 : index
    %c0_4 = arith.constant 0 : index
    %3 = vector.load %arg4[%c0_3, %c0_4] : memref<1x256xf32, #tpu.memory_space<vmem>>, vector<1x256xf32>
    %4 = vector.broadcast %3 : vector<1x256xf32> to vector<64x256xf32>
    %5 = arith.addf %2, %4 : vector<64x256xf32>
    %c0_5 = arith.constant 0 : index
    %c0_6 = arith.constant 0 : index
    %6 = vector.load %arg8[%c0_5, %c0_6] : memref<64x256xf32, #tpu.memory_space<vmem>>, vector<64x256xf32>
    tpu.vector_store %arg8[%c0_5, %c0_6], %5 {strides = array<i32>} : memref<64x256xf32, #tpu.memory_space<vmem>>, vector<64x256xf32>,
    %cst_7 = arith.constant 0.000000e+00 : f32
    %7 = vector.broadcast %cst_7 : f32 to vector<8x64xf32>
    %cst_8 = arith.constant 0.000000e+00 : f32
    %8 = vector.broadcast %cst_8 : f32 to vector<8x64xf32>
    %c0_i32 = arith.constant 0 : i32
    %c8_i32 = arith.constant 8 : i32
    %9 = arith.muli %c0_i32, %c8_i32 : i32
    %10 = tpu.assume_multiple %9, 8 : i32
    %11 = arith.index_cast %10 : i32 to index
    %c0_9 = arith.constant 0 : index
    %12 = vector.load %arg8[%11, %c0_9] : memref<64x256xf32, #tpu.memory_space<vmem>>, vector<8x256xf32>
    %c0_10 = arith.constant 0 : index
    %c0_11 = arith.constant 0 : index
    %13 = vector.load %arg3[%c0_10, %c0_11] : memref<64x256xf32, #tpu.memory_space<vmem>>, vector<64x256xf32>
    %cst_12 = arith.constant dense<0.000000e+00> : vector<8x256xf32>
    %14 = tpu.matmul %7, %13, %cst_12 {dimension_numbers = #tpu.dot_dimension_numbers<[1], [0], [0], [1], [0, 0, 1, 1], [], []>} : vector<8x64xf32>, vector<64x256xf32>, vector<8x256xf32> -> vector<8x256xf32>
    %15 = arith.addf %12, %14 : vector<8x256xf32>
    %16 = math.tanh %15 : vector<8x256xf32>
    %17 = vector.extract_strided_slice %16 {offsets = [0, 0], sizes = [8, 192], strides = [1, 1]} : vector<8x256xf32> to vector<8x192xf32>
    %cst_13 = arith.constant 5.000000e-01 : f32
    %18 = vector.broadcast %cst_13 : f32 to vector<8x192xf32>
    %19 = arith.mulf %18, %17 : vector<8x192xf32>
    %cst_14 = arith.constant 5.000000e-01 : f32
    %20 = vector.broadcast %cst_14 : f32 to vector<8x192xf32>
    %21 = arith.addf %19, %20 : vector<8x192xf32>
    %22 = vector.extract_strided_slice %21 {offsets = [0, 0], sizes = [8, 64], strides = [1, 1]} : vector<8x192xf32> to vector<8x64xf32>
    %23 = vector.extract_strided_slice %21 {offsets = [0, 64], sizes = [8, 64], strides = [1, 1]} : vector<8x192xf32> to vector<8x64xf32>
    %24 = vector.extract_strided_slice %21 {offsets = [0, 128], sizes = [8, 64], strides = [1, 1]} : vector<8x192xf32> to vector<8x64xf32>
    %25 = vector.extract_strided_slice %16 {offsets = [0, 192], sizes = [8, 64], strides = [1, 1]} : vector<8x256xf32> to vector<8x64xf32>
    %26 = arith.mulf %23, %8 : vector<8x64xf32>
    %27 = arith.mulf %22, %25 : vector<8x64xf32>
    %28 = arith.addf %26, %27 : vector<8x64xf32>
    %29 = math.tanh %28 : vector<8x64xf32>
    %30 = arith.mulf %24, %29 : vector<8x64xf32>
    %c1_i32 = arith.constant 1 : i32
    %c8_i32_15 = arith.constant 8 : i32
    %31 = arith.muli %c1_i32, %c8_i32_15 : i32
    %32 = tpu.assume_multiple %31, 8 : i32
    %33 = arith.index_cast %32 : i32 to index
    %c0_16 = arith.constant 0 : index
    %34 = vector.load %arg8[%33, %c0_16] : memref<64x256xf32, #tpu.memory_space<vmem>>, vector<8x256xf32>
    %c0_17 = arith.constant 0 : index
    %c0_18 = arith.constant 0 : index
    %35 = vector.load %arg3[%c0_17, %c0_18] : memref<64x256xf32, #tpu.memory_space<vmem>>, vector<64x256xf32>
    %cst_19 = arith.constant dense<0.000000e+00> : vector<8x256xf32>
    %36 = tpu.matmul %30, %35, %cst_19 {dimension_numbers = #tpu.dot_dimension_numbers<[1], [0], [0], [1], [0, 0, 1, 1], [], []>} : vector<8x64xf32>, vector<64x256xf32>, vector<8x256xf32> -> vector<8x256xf32>
    %37 = arith.addf %34, %36 : vector<8x256xf32>
    %38 = math.tanh %37 : vector<8x256xf32>
    %39 = vector.extract_strided_slice %38 {offsets = [0, 0], sizes = [8, 192], strides = [1, 1]} : vector<8x256xf32> to vector<8x192xf32>
    %cst_20 = arith.constant 5.000000e-01 : f32
    %40 = vector.broadcast %cst_20 : f32 to vector<8x192xf32>
    %41 = arith.mulf %40, %39 : vector<8x192xf32>
    %cst_21 = arith.constant 5.000000e-01 : f32
    %42 = vector.broadcast %cst_21 : f32 to vector<8x192xf32>
    %43 = arith.addf %41, %42 : vector<8x192xf32>
    %44 = vector.extract_strided_slice %43 {offsets = [0, 0], sizes = [8, 64], strides = [1, 1]} : vector<8x192xf32> to vector<8x64xf32>
    %45 = vector.extract_strided_slice %43 {offsets = [0, 64], sizes = [8, 64], strides = [1, 1]} : vector<8x192xf32> to vector<8x64xf32>
    %46 = vector.extract_strided_slice %43 {offsets = [0, 128], sizes = [8, 64], strides = [1, 1]} : vector<8x192xf32> to vector<8x64xf32>
    %47 = vector.extract_strided_slice %38 {offsets = [0, 192], sizes = [8, 64], strides = [1, 1]} : vector<8x256xf32> to vector<8x64xf32>
    %48 = arith.mulf %45, %28 : vector<8x64xf32>
    %49 = arith.mulf %44, %47 : vector<8x64xf32>
    %50 = arith.addf %48, %49 : vector<8x64xf32>
    %51 = math.tanh %50 : vector<8x64xf32>
    %52 = arith.mulf %46, %51 : vector<8x64xf32>
    %c2_i32 = arith.constant 2 : i32
    %c8_i32_22 = arith.constant 8 : i32
    %53 = arith.muli %c2_i32, %c8_i32_22 : i32
    %54 = tpu.assume_multiple %53, 8 : i32
    %55 = arith.index_cast %54 : i32 to index
    %c0_23 = arith.constant 0 : index
    %56 = vector.load %arg8[%55, %c0_23] : memref<64x256xf32, #tpu.memory_space<vmem>>, vector<8x256xf32>
    %c0_24 = arith.constant 0 : index
    %c0_25 = arith.constant 0 : index
    %57 = vector.load %arg3[%c0_24, %c0_25] : memref<64x256xf32, #tpu.memory_space<vmem>>, vector<64x256xf32>
    %cst_26 = arith.constant dense<0.000000e+00> : vector<8x256xf32>
    %58 = tpu.matmul %52, %57, %cst_26 {dimension_numbers = #tpu.dot_dimension_numbers<[1], [0], [0], [1], [0, 0, 1, 1], [], []>} : vector<8x64xf32>, vector<64x256xf32>, vector<8x256xf32> -> vector<8x256xf32>
    %59 = arith.addf %56, %58 : vector<8x256xf32>
    %60 = math.tanh %59 : vector<8x256xf32>
    %61 = vector.extract_strided_slice %60 {offsets = [0, 0], sizes = [8, 192], strides = [1, 1]} : vector<8x256xf32> to vector<8x192xf32>
    %cst_27 = arith.constant 5.000000e-01 : f32
    %62 = vector.broadcast %cst_27 : f32 to vector<8x192xf32>
    %63 = arith.mulf %62, %61 : vector<8x192xf32>
    %cst_28 = arith.constant 5.000000e-01 : f32
    %64 = vector.broadcast %cst_28 : f32 to vector<8x192xf32>
    %65 = arith.addf %63, %64 : vector<8x192xf32>
    %66 = vector.extract_strided_slice %65 {offsets = [0, 0], sizes = [8, 64], strides = [1, 1]} : vector<8x192xf32> to vector<8x64xf32>
    %67 = vector.extract_strided_slice %65 {offsets = [0, 64], sizes = [8, 64], strides = [1, 1]} : vector<8x192xf32> to vector<8x64xf32>
    %68 = vector.extract_strided_slice %65 {offsets = [0, 128], sizes = [8, 64], strides = [1, 1]} : vector<8x192xf32> to vector<8x64xf32>
    %69 = vector.extract_strided_slice %60 {offsets = [0, 192], sizes = [8, 64], strides = [1, 1]} : vector<8x256xf32> to vector<8x64xf32>
    %70 = arith.mulf %67, %50 : vector<8x64xf32>
    %71 = arith.mulf %66, %69 : vector<8x64xf32>
    %72 = arith.addf %70, %71 : vector<8x64xf32>
    %73 = math.tanh %72 : vector<8x64xf32>
    %74 = arith.mulf %68, %73 : vector<8x64xf32>
    %c3_i32 = arith.constant 3 : i32
    %c8_i32_29 = arith.constant 8 : i32
    %75 = arith.muli %c3_i32, %c8_i32_29 : i32
    %76 = tpu.assume_multiple %75, 8 : i32
    %77 = arith.index_cast %76 : i32 to index
    %c0_30 = arith.constant 0 : index
    %78 = vector.load %arg8[%77, %c0_30] : memref<64x256xf32, #tpu.memory_space<vmem>>, vector<8x256xf32>
    %c0_31 = arith.constant 0 : index
    %c0_32 = arith.constant 0 : index
    %79 = vector.load %arg3[%c0_31, %c0_32] : memref<64x256xf32, #tpu.memory_space<vmem>>, vector<64x256xf32>
    %cst_33 = arith.constant dense<0.000000e+00> : vector<8x256xf32>
    %80 = tpu.matmul %74, %79, %cst_33 {dimension_numbers = #tpu.dot_dimension_numbers<[1], [0], [0], [1], [0, 0, 1, 1], [], []>} : vector<8x64xf32>, vector<64x256xf32>, vector<8x256xf32> -> vector<8x256xf32>
    %81 = arith.addf %78, %80 : vector<8x256xf32>
    %82 = math.tanh %81 : vector<8x256xf32>
    %83 = vector.extract_strided_slice %82 {offsets = [0, 0], sizes = [8, 192], strides = [1, 1]} : vector<8x256xf32> to vector<8x192xf32>
    %cst_34 = arith.constant 5.000000e-01 : f32
    %84 = vector.broadcast %cst_34 : f32 to vector<8x192xf32>
    %85 = arith.mulf %84, %83 : vector<8x192xf32>
    %cst_35 = arith.constant 5.000000e-01 : f32
    %86 = vector.broadcast %cst_35 : f32 to vector<8x192xf32>
    %87 = arith.addf %85, %86 : vector<8x192xf32>
    %88 = vector.extract_strided_slice %87 {offsets = [0, 0], sizes = [8, 64], strides = [1, 1]} : vector<8x192xf32> to vector<8x64xf32>
    %89 = vector.extract_strided_slice %87 {offsets = [0, 64], sizes = [8, 64], strides = [1, 1]} : vector<8x192xf32> to vector<8x64xf32>
    %90 = vector.extract_strided_slice %87 {offsets = [0, 128], sizes = [8, 64], strides = [1, 1]} : vector<8x192xf32> to vector<8x64xf32>
    %91 = vector.extract_strided_slice %82 {offsets = [0, 192], sizes = [8, 64], strides = [1, 1]} : vector<8x256xf32> to vector<8x64xf32>
    %92 = arith.mulf %89, %72 : vector<8x64xf32>
    %93 = arith.mulf %88, %91 : vector<8x64xf32>
    %94 = arith.addf %92, %93 : vector<8x64xf32>
    %95 = math.tanh %94 : vector<8x64xf32>
    %96 = arith.mulf %90, %95 : vector<8x64xf32>
    %c4_i32 = arith.constant 4 : i32
    %c8_i32_36 = arith.constant 8 : i32
    %97 = arith.muli %c4_i32, %c8_i32_36 : i32
    %98 = tpu.assume_multiple %97, 8 : i32
    %99 = arith.index_cast %98 : i32 to index
    %c0_37 = arith.constant 0 : index
    %100 = vector.load %arg8[%99, %c0_37] : memref<64x256xf32, #tpu.memory_space<vmem>>, vector<8x256xf32>
    %c0_38 = arith.constant 0 : index
    %c0_39 = arith.constant 0 : index
    %101 = vector.load %arg3[%c0_38, %c0_39] : memref<64x256xf32, #tpu.memory_space<vmem>>, vector<64x256xf32>
    %cst_40 = arith.constant dense<0.000000e+00> : vector<8x256xf32>
    %102 = tpu.matmul %96, %101, %cst_40 {dimension_numbers = #tpu.dot_dimension_numbers<[1], [0], [0], [1], [0, 0, 1, 1], [], []>} : vector<8x64xf32>, vector<64x256xf32>, vector<8x256xf32> -> vector<8x256xf32>
    %103 = arith.addf %100, %102 : vector<8x256xf32>
    %104 = math.tanh %103 : vector<8x256xf32>
    %105 = vector.extract_strided_slice %104 {offsets = [0, 0], sizes = [8, 192], strides = [1, 1]} : vector<8x256xf32> to vector<8x192xf32>
    %cst_41 = arith.constant 5.000000e-01 : f32
    %106 = vector.broadcast %cst_41 : f32 to vector<8x192xf32>
    %107 = arith.mulf %106, %105 : vector<8x192xf32>
    %cst_42 = arith.constant 5.000000e-01 : f32
    %108 = vector.broadcast %cst_42 : f32 to vector<8x192xf32>
    %109 = arith.addf %107, %108 : vector<8x192xf32>
    %110 = vector.extract_strided_slice %109 {offsets = [0, 0], sizes = [8, 64], strides = [1, 1]} : vector<8x192xf32> to vector<8x64xf32>
    %111 = vector.extract_strided_slice %109 {offsets = [0, 64], sizes = [8, 64], strides = [1, 1]} : vector<8x192xf32> to vector<8x64xf32>
    %112 = vector.extract_strided_slice %109 {offsets = [0, 128], sizes = [8, 64], strides = [1, 1]} : vector<8x192xf32> to vector<8x64xf32>
    %113 = vector.extract_strided_slice %104 {offsets = [0, 192], sizes = [8, 64], strides = [1, 1]} : vector<8x256xf32> to vector<8x64xf32>
    %114 = arith.mulf %111, %94 : vector<8x64xf32>
    %115 = arith.mulf %110, %113 : vector<8x64xf32>
    %116 = arith.addf %114, %115 : vector<8x64xf32>
    %117 = math.tanh %116 : vector<8x64xf32>
    %118 = arith.mulf %112, %117 : vector<8x64xf32>
    %c5_i32 = arith.constant 5 : i32
    %c8_i32_43 = arith.constant 8 : i32
    %119 = arith.muli %c5_i32, %c8_i32_43 : i32
    %120 = tpu.assume_multiple %119, 8 : i32
    %121 = arith.index_cast %120 : i32 to index
    %c0_44 = arith.constant 0 : index
    %122 = vector.load %arg8[%121, %c0_44] : memref<64x256xf32, #tpu.memory_space<vmem>>, vector<8x256xf32>
    %c0_45 = arith.constant 0 : index
    %c0_46 = arith.constant 0 : index
    %123 = vector.load %arg3[%c0_45, %c0_46] : memref<64x256xf32, #tpu.memory_space<vmem>>, vector<64x256xf32>
    %cst_47 = arith.constant dense<0.000000e+00> : vector<8x256xf32>
    %124 = tpu.matmul %118, %123, %cst_47 {dimension_numbers = #tpu.dot_dimension_numbers<[1], [0], [0], [1], [0, 0, 1, 1], [], []>} : vector<8x64xf32>, vector<64x256xf32>, vector<8x256xf32> -> vector<8x256xf32>
    %125 = arith.addf %122, %124 : vector<8x256xf32>
    %126 = math.tanh %125 : vector<8x256xf32>
    %127 = vector.extract_strided_slice %126 {offsets = [0, 0], sizes = [8, 192], strides = [1, 1]} : vector<8x256xf32> to vector<8x192xf32>
    %cst_48 = arith.constant 5.000000e-01 : f32
    %128 = vector.broadcast %cst_48 : f32 to vector<8x192xf32>
    %129 = arith.mulf %128, %127 : vector<8x192xf32>
    %cst_49 = arith.constant 5.000000e-01 : f32
    %130 = vector.broadcast %cst_49 : f32 to vector<8x192xf32>
    %131 = arith.addf %129, %130 : vector<8x192xf32>
    %132 = vector.extract_strided_slice %131 {offsets = [0, 0], sizes = [8, 64], strides = [1, 1]} : vector<8x192xf32> to vector<8x64xf32>
    %133 = vector.extract_strided_slice %131 {offsets = [0, 64], sizes = [8, 64], strides = [1, 1]} : vector<8x192xf32> to vector<8x64xf32>
    %134 = vector.extract_strided_slice %131 {offsets = [0, 128], sizes = [8, 64], strides = [1, 1]} : vector<8x192xf32> to vector<8x64xf32>
    %135 = vector.extract_strided_slice %126 {offsets = [0, 192], sizes = [8, 64], strides = [1, 1]} : vector<8x256xf32> to vector<8x64xf32>
    %136 = arith.mulf %133, %116 : vector<8x64xf32>
    %137 = arith.mulf %132, %135 : vector<8x64xf32>
    %138 = arith.addf %136, %137 : vector<8x64xf32>
    %139 = math.tanh %138 : vector<8x64xf32>
    %140 = arith.mulf %134, %139 : vector<8x64xf32>
    %c6_i32 = arith.constant 6 : i32
    %c8_i32_50 = arith.constant 8 : i32
    %141 = arith.muli %c6_i32, %c8_i32_50 : i32
    %142 = tpu.assume_multiple %141, 8 : i32
    %143 = arith.index_cast %142 : i32 to index
    %c0_51 = arith.constant 0 : index
    %144 = vector.load %arg8[%143, %c0_51] : memref<64x256xf32, #tpu.memory_space<vmem>>, vector<8x256xf32>
    %c0_52 = arith.constant 0 : index
    %c0_53 = arith.constant 0 : index
    %145 = vector.load %arg3[%c0_52, %c0_53] : memref<64x256xf32, #tpu.memory_space<vmem>>, vector<64x256xf32>
    %cst_54 = arith.constant dense<0.000000e+00> : vector<8x256xf32>
    %146 = tpu.matmul %140, %145, %cst_54 {dimension_numbers = #tpu.dot_dimension_numbers<[1], [0], [0], [1], [0, 0, 1, 1], [], []>} : vector<8x64xf32>, vector<64x256xf32>, vector<8x256xf32> -> vector<8x256xf32>
    %147 = arith.addf %144, %146 : vector<8x256xf32>
    %148 = math.tanh %147 : vector<8x256xf32>
    %149 = vector.extract_strided_slice %148 {offsets = [0, 0], sizes = [8, 192], strides = [1, 1]} : vector<8x256xf32> to vector<8x192xf32>
    %cst_55 = arith.constant 5.000000e-01 : f32
    %150 = vector.broadcast %cst_55 : f32 to vector<8x192xf32>
    %151 = arith.mulf %150, %149 : vector<8x192xf32>
    %cst_56 = arith.constant 5.000000e-01 : f32
    %152 = vector.broadcast %cst_56 : f32 to vector<8x192xf32>
    %153 = arith.addf %151, %152 : vector<8x192xf32>
    %154 = vector.extract_strided_slice %153 {offsets = [0, 0], sizes = [8, 64], strides = [1, 1]} : vector<8x192xf32> to vector<8x64xf32>
    %155 = vector.extract_strided_slice %153 {offsets = [0, 64], sizes = [8, 64], strides = [1, 1]} : vector<8x192xf32> to vector<8x64xf32>
    %156 = vector.extract_strided_slice %153 {offsets = [0, 128], sizes = [8, 64], strides = [1, 1]} : vector<8x192xf32> to vector<8x64xf32>
    %157 = vector.extract_strided_slice %148 {offsets = [0, 192], sizes = [8, 64], strides = [1, 1]} : vector<8x256xf32> to vector<8x64xf32>
    %158 = arith.mulf %155, %138 : vector<8x64xf32>
    %159 = arith.mulf %154, %157 : vector<8x64xf32>
    %160 = arith.addf %158, %159 : vector<8x64xf32>
    %161 = math.tanh %160 : vector<8x64xf32>
    %162 = arith.mulf %156, %161 : vector<8x64xf32>
    %c7_i32 = arith.constant 7 : i32
    %c8_i32_57 = arith.constant 8 : i32
    %163 = arith.muli %c7_i32, %c8_i32_57 : i32
    %164 = tpu.assume_multiple %163, 8 : i32
    %165 = arith.index_cast %164 : i32 to index
    %c0_58 = arith.constant 0 : index
    %166 = vector.load %arg8[%165, %c0_58] : memref<64x256xf32, #tpu.memory_space<vmem>>, vector<8x256xf32>
    %c0_59 = arith.constant 0 : index
    %c0_60 = arith.constant 0 : index
    %167 = vector.load %arg3[%c0_59, %c0_60] : memref<64x256xf32, #tpu.memory_space<vmem>>, vector<64x256xf32>
    %cst_61 = arith.constant dense<0.000000e+00> : vector<8x256xf32>
    %168 = tpu.matmul %162, %167, %cst_61 {dimension_numbers = #tpu.dot_dimension_numbers<[1], [0], [0], [1], [0, 0, 1, 1], [], []>} : vector<8x64xf32>, vector<64x256xf32>, vector<8x256xf32> -> vector<8x256xf32>
    %169 = arith.addf %166, %168 : vector<8x256xf32>
    %170 = math.tanh %169 : vector<8x256xf32>
    %171 = vector.extract_strided_slice %170 {offsets = [0, 0], sizes = [8, 192], strides = [1, 1]} : vector<8x256xf32> to vector<8x192xf32>
    %cst_62 = arith.constant 5.000000e-01 : f32
    %172 = vector.broadcast %cst_62 : f32 to vector<8x192xf32>
    %173 = arith.mulf %172, %171 : vector<8x192xf32>
    %cst_63 = arith.constant 5.000000e-01 : f32
    %174 = vector.broadcast %cst_63 : f32 to vector<8x192xf32>
    %175 = arith.addf %173, %174 : vector<8x192xf32>
    %176 = vector.extract_strided_slice %175 {offsets = [0, 0], sizes = [8, 64], strides = [1, 1]} : vector<8x192xf32> to vector<8x64xf32>
    %177 = vector.extract_strided_slice %175 {offsets = [0, 64], sizes = [8, 64], strides = [1, 1]} : vector<8x192xf32> to vector<8x64xf32>
    %178 = vector.extract_strided_slice %175 {offsets = [0, 128], sizes = [8, 64], strides = [1, 1]} : vector<8x192xf32> to vector<8x64xf32>
    %179 = vector.extract_strided_slice %170 {offsets = [0, 192], sizes = [8, 64], strides = [1, 1]} : vector<8x256xf32> to vector<8x64xf32>
    %180 = arith.mulf %177, %160 : vector<8x64xf32>
    %181 = arith.mulf %176, %179 : vector<8x64xf32>
    %182 = arith.addf %180, %181 : vector<8x64xf32>
    %183 = math.tanh %182 : vector<8x64xf32>
    %184 = arith.mulf %178, %183 : vector<8x64xf32>
    %c8_i32_64 = arith.constant 8 : i32
    %c0_65 = arith.constant 0 : index
    %c0_66 = arith.constant 0 : index
    %185 = vector.load %arg5[%c0_65, %c0_66] : memref<64x128xf32, #tpu.memory_space<vmem>>, vector<64x128xf32>
    %cst_67 = arith.constant dense<0.000000e+00> : vector<8x128xf32>
    %186 = tpu.matmul %184, %185, %cst_67 {dimension_numbers = #tpu.dot_dimension_numbers<[1], [0], [0], [1], [0, 0, 1, 1], [], []>} : vector<8x64xf32>, vector<64x128xf32>, vector<8x128xf32> -> vector<8x128xf32>
    %c0_68 = arith.constant 0 : index
    %c0_69 = arith.constant 0 : index
    %187 = vector.load %arg6[%c0_68, %c0_69] : memref<1x128xf32, #tpu.memory_space<vmem>>, vector<1x128xf32>
    %188 = vector.broadcast %187 : vector<1x128xf32> to vector<8x128xf32>
    %189 = arith.addf %186, %188 : vector<8x128xf32>
    %c0_70 = arith.constant 0 : index
    %c0_71 = arith.constant 0 : index
    %190 = vector.load %arg7[%c0_70, %c0_71] : memref<8x128xf32, #tpu.memory_space<vmem>>, vector<8x128xf32>
    tpu.vector_store %arg7[%c0_70, %c0_71], %189 {strides = array<i32>} : memref<8x128xf32, #tpu.memory_space<vmem>>, vector<8x128xf32>,
    return
  }
  func.func @transform_0(%arg0: i32) -> (i32, i32) {
    %c0_i32 = arith.constant 0 : i32
    %c0_i32_0 = arith.constant 0 : i32
    return %arg0, %c0_i32 : i32, i32
  }
  func.func @transform_1(%arg0: i32) -> (i32, i32) {
    %c0_i32 = arith.constant 0 : i32
    %c0_i32_0 = arith.constant 0 : i32
    %c0_i32_1 = arith.constant 0 : i32
    return %c0_i32, %c0_i32_0 : i32, i32
  }
  func.func @transform_2(%arg0: i32) -> (i32, i32) {
    %c0_i32 = arith.constant 0 : i32
    %c0_i32_0 = arith.constant 0 : i32
    %c0_i32_1 = arith.constant 0 : i32
    return %c0_i32, %c0_i32_0 : i32, i32
  }
  func.func @transform_3(%arg0: i32) -> (i32, i32) {
    %c0_i32 = arith.constant 0 : i32
    %c0_i32_0 = arith.constant 0 : i32
    %c0_i32_1 = arith.constant 0 : i32
    return %c0_i32, %c0_i32_0 : i32, i32
  }
  func.func @transform_4(%arg0: i32) -> (i32, i32) {
    %c0_i32 = arith.constant 0 : i32
    %c0_i32_0 = arith.constant 0 : i32
    %c0_i32_1 = arith.constant 0 : i32
    return %c0_i32, %c0_i32_0 : i32, i32
  }
  func.func @transform_5(%arg0: i32) -> (i32, i32) {
    %c0_i32 = arith.constant 0 : i32
    %c0_i32_0 = arith.constant 0 : i32
    %c0_i32_1 = arith.constant 0 : i32
    return %c0_i32, %c0_i32_0 : i32, i32
  }
  func.func @transform_6(%arg0: i32) -> (i32, i32) {
    %c0_i32 = arith.constant 0 : i32
    %c0_i32_0 = arith.constant 0 : i32
    return %arg0, %c0_i32 : i32, i32
  }
}

</mosaic_0001>

<bundles_post_ra>
// kernel: tpu_custom_call.1
= control target key start
LH: loop header
LB: loop body
LE: loop exit
PB: predicated region body
PF: predicated region fallthrough
CT: control target
= control target key end

     0   :  { %11 = vsyncpa [#allocation4], 0  ;;  %s1386_s0 = inlined_call_operand.vmem [shape: f32[64,32], index: 0, kind: input, shape index: {}]   ;;  %s1387_s1 = inlined_call_operand.vmem [shape: f32[32,256], index: 1, kind: input, shape index: {}]   ;;  %s1388_s2 = inlined_call_operand.hbm [shape: f32[64,256], index: 2, kind: input, shape index: {}]   ;;  %s1389_s3 = inlined_call_operand.vmem [shape: f32[1,256], index: 3, kind: input, shape index: {}]   ;;  %s1390_s4 = inlined_call_operand.hbm [shape: f32[64,128], index: 4, kind: input, shape index: {}]   ;;  %s1391_s5 = inlined_call_operand.vmem [shape: f32[1,128], index: 5, kind: input, shape index: {}]   ;;  %s1392_s6 = inlined_call_operand.hbm [shape: f32[8,128], index: 6, kind: output, shape index: {}]  }
   0x1   :  { %12 = vsyncpa [#allocation7], 0 }
   0x2   :  { %13 = vsyncpa [#allocation5], 0  ;;  %s22_s23 = sshll.u32 %s1388_s2, 4  ;;  %s1034_s24 = smov [#allocation3]   ;;  %s23_s23 = int_to_ptr.hbm [resolvable:$true] %s22_s23 }
   0x3   :  { %s24_s25 = sshll.u32 %s1034_s24, 4  ;;  %s37_s28 = sshll.u32 %s1390_s4, 4  ;;  %s25_s25 = int_to_ptr.vmem [resolvable:$true] %s24_s25  ;;  %s38_s28 = int_to_ptr.hbm [resolvable:$true] %s37_s28 }
   0x4   :  { %s1035_s29 = smov 256   ;;  %s1036_s30 = smov 16  }
   0x5   :  { %30 = dma.hbm_to_vmem [thread:$0]  %s23_s23, 2048, %s25_s25, [#allocation4], %s1035_s29, %s1035_s29, %s1036_s30  }
   0x6   :  { %s1037_s7 = smov [#allocation6]   ;;  %s1038_s9 = smov 128  }
   0x7   :  { %s39_s8 = sshll.u32 %s1037_s7, 4  ;;  %s1039_s10 = smov 8   ;;  %s40_s8 = int_to_ptr.vmem [resolvable:$true] %s39_s8 }
   0x8   :  { %45 = dma.hbm_to_vmem [thread:$0]  %s38_s28, 1024, %s40_s8, [#allocation7], %s1038_s9, %s1038_s9, %s1039_s10  }
   0x9   :  { %1028 = dma.done.wait [#allocation4], 2048  }
   0xa   :  { %1029 = vsyncadd [#allocation4], 4294965248 }
   0xb   :  { %1030 = dma.done.wait [#allocation7], 1024  }
   0xc   :  { %1031 = vsyncadd [#allocation7], 4294966272  ;;  %v1084_v0 = vld [vmem:[#allocation3 + $0x78] sm:$0xff]  ;;  %v1086_v1 = vld [vmem:[#allocation3 + $0x68] sm:$0xff]  ;;  %vm78_vm0 = vcmask 261120   ;;  %v1040_v23 = vmov 0.0  }
   0xd   :  { %v70_v2 = vld [vmem:[%s1387_s1 + $0x30] sm:$0xff]  ;;  %254 = vmatpush.msra.mxu3 %v1084_v0  ;;  %v68_v3 = vld [vmem:[%s1387_s1 + $0x20] sm:$0xff]  ;;  %v1095_v4 = vld [vmem:[#allocation3 + $0x58] sm:$0xff]  ;;  %s1041_s30 = smov 64   ;;  %vm222_vm1 = vcmask 523264   ;;  %s1042_s17 = smov [#allocation8]  }
   0xe   :  { %894 = vmatpush.msra.mxu1 %v70_v2  ;;  %v66_v5 = vld [vmem:[%s1387_s1 + $0x10] sm:$0xff]  ;;  %115 = vmatpush.msra.mxu0 %v70_v2  ;;  %v1101_v6 = vld [vmem:[#allocation3 + $0x48] sm:$0xff]  ;;  %v64_v7 = vld [vmem:[%s1387_s1] sm:$0xff]  ;;  %s843_s18 = sshll.u32 %s1042_s17, 4  ;;  %s845_s21 = sshll.u32 %s1392_s6, 4  ;;  %s844_s18 = int_to_ptr.vmem [resolvable:$true] %s843_s18  ;;  %s846_s21 = int_to_ptr.hbm [resolvable:$true] %s845_s21 }
   0xf   :  { %255 = vmatpush.msra.mxu3 %v1086_v1  ;;  %v1110_v8 = vld [vmem:[%s1386_s0 + $0x38] sm:$0xff]  ;;  %v1117_v11 = vld [vmem:[#allocation3 + $0x70] sm:$0xff]  ;;  %v1120_v12 = vld [vmem:[#allocation3 + $0x60] sm:$0xff] }
  0x10   :  { %895 = vmatpush.msra.mxu1 %v68_v3  ;;  %116 = vmatpush.msra.mxu0 %v68_v3  ;;  %v1112_v9 = vld [vmem:[#allocation3 + $0x38] sm:$0xff]  ;;  %v1122_v13 = vld [vmem:[#allocation3 + $0x28] sm:$0xff]  ;;  %v1131_v15 = vld [vmem:[#allocation3 + $0x50] sm:$0xff] }
  0x11   :  { %256 = vmatpush.msra.mxu3 %v1095_v4  ;;  %v71_v10 = vld [vmem:[%s1387_s1 + $0x38] sm:$0xff]  ;;  %v69_v14 = vld [vmem:[%s1387_s1 + $0x28] sm:$0xff]  ;;  %234 = vmatpush.msra.mxu2 %v1117_v11  ;;  %v56_v18 = vld [vmem:[%s1386_s0] sm:$0xff] }
  0x12   :  { %896 = vmatpush.msra.mxu1 %v66_v5  ;;  %117 = vmatpush.msra.mxu0 %v66_v5  ;;  %v1133_v16 = vld [vmem:[#allocation3 + $0x18] sm:$0xff]  ;;  %v1143_v19 = vld [vmem:[#allocation3 + $0x40] sm:$0xff]  ;;  %v1145_v20 = vld [vmem:[#allocation3 + $0x8] sm:$0xff] }
  0x13   :  { %257 = vmatpush.msra.mxu3 %v1101_v6  ;;  %v67_v17 = vld [vmem:[%s1387_s1 + $0x18] sm:$0xff]  ;;  %235 = vmatpush.msra.mxu2 %v1120_v12  ;;  %v65_v21 = vld [vmem:[%s1387_s1 + $0x8] sm:$0xff]  ;;  %v1154_v22 = vld [vmem:[#allocation3 + $0x30] sm:$0xff] }
  0x14   :  { %897 = vmatpush.msra.mxu1 %v64_v7  ;;  %118 = vmatpush.msra.mxu0 %v64_v7  ;;  %v1159_v24 = vld [vmem:[#allocation3 + $0x20] sm:$0xff]  ;;  %v1163_v25 = vld [vmem:[#allocation3 + $0x10] sm:$0xff]  ;;  %v57_v49 = vld [vmem:[%s1386_s0 + $0x8] sm:$0xff] }
  0x15   :  { %870 = vmatmul.msk.f32.vlgmr.msra.gmra.mxu1 %vm78_vm0, %v1110_v8  ;;  %258 = vmatpush.msra.mxu3 %v1112_v9  ;;  %v1169_v26 = vld [vmem:[#allocation3] sm:$0xff] }
  0x16   :  { %156 = vmatpush.msrb.mxu1 %v71_v10  ;;  %236 = vmatpush.msra.mxu2 %v1131_v15  ;;  %v72_v28 = vld [vmem:[%s1389_s3] sm:$0x3] }
  0x17   :  { %259 = vmatpush.msra.mxu3 %v1122_v13  ;;  %863 = vmatmul.msk.f32.vlgmr.msra.gmra.mxu0 %vm78_vm0, %v56_v18  ;;  %v1237_v29 = vperm.slane %v72_v28, 1  ;;  %v1241_v36 = vperm.slane %v72_v28, 0 }
  0x18   :  { %157 = vmatpush.msrb.mxu1 %v69_v14  ;;  %237 = vmatpush.msra.mxu2 %v1143_v19 }
  0x19   :  { %260 = vmatpush.msra.mxu3 %v1133_v16  ;;  %526 = vmatpush.msrb.mxu0 %v1117_v11 }
  0x1a   :  { %158 = vmatpush.msrb.mxu1 %v67_v17  ;;  %238 = vmatpush.msra.mxu2 %v1154_v22 }
  0x1b   :  { %261 = vmatpush.msra.mxu3 %v1145_v20  ;;  %527 = vmatpush.msrb.mxu0 %v1120_v12 }
  0x1c   :  { %159 = vmatpush.msrb.mxu1 %v65_v21  ;;  %262 = vmatmul.f32.vlgmr.msra.gmra.mxu3 %v1040_v23  ;;  %v58_v21 = vld [vmem:[%s1386_s0 + $0x10] sm:$0xff] }
  0x1d   :  { %871 = vmatmul.msk.f32.vlgmr.msrb.gmra.mxu1 %vm78_vm0, %v56_v18  ;;  %327 = vmatpush.msrb.mxu3 %v1084_v0 }
  0x1e   :  { %546 = vmatpush.msra.mxu1 %v1084_v0  ;;  %239 = vmatpush.msra.mxu2 %v1159_v24 }
  0x1f   :  { %328 = vmatpush.msrb.mxu3 %v1086_v1  ;;  %528 = vmatpush.msrb.mxu0 %v1131_v15 }
  0x20   :  { %547 = vmatpush.msra.mxu1 %v1086_v1  ;;  %240 = vmatpush.msra.mxu2 %v1163_v25 }
  0x21   :  { %329 = vmatpush.msrb.mxu3 %v1095_v4  ;;  %529 = vmatpush.msrb.mxu0 %v1143_v19 }
  0x22   :  { %548 = vmatpush.msra.mxu1 %v1095_v4  ;;  %241 = vmatpush.msra.mxu2 %v1169_v26 }
  0x23   :  { %330 = vmatpush.msrb.mxu3 %v1101_v6  ;;  %242 = vmatmul.f32.vlgmr.msra.gmra.mxu2 %v1040_v23 }
  0x24   :  { %549 = vmatpush.msra.mxu1 %v1101_v6  ;;  %307 = vmatpush.msrb.mxu2 %v1117_v11 }
  0x25   :  { %331 = vmatpush.msrb.mxu3 %v1112_v9  ;;  %530 = vmatpush.msrb.mxu0 %v1154_v22 }
  0x26   :  { %550 = vmatpush.msra.mxu1 %v1112_v9  ;;  %308 = vmatpush.msrb.mxu2 %v1120_v12 }
  0x27   :  { %332 = vmatpush.msrb.mxu3 %v1122_v13  ;;  %531 = vmatpush.msrb.mxu0 %v1159_v24 }
  0x28   :  { %551 = vmatpush.msra.mxu1 %v1122_v13  ;;  %309 = vmatpush.msrb.mxu2 %v1131_v15 }
  0x29   :  { %333 = vmatpush.msrb.mxu3 %v1133_v16  ;;  %532 = vmatpush.msrb.mxu0 %v1163_v25 }
  0x2a   :  { %552 = vmatpush.msra.mxu1 %v1133_v16  ;;  %310 = vmatpush.msrb.mxu2 %v1143_v19 }
  0x2b   :  { %334 = vmatpush.msrb.mxu3 %v1145_v20  ;;  %533 = vmatpush.msrb.mxu0 %v1169_v26 }
  0x2c   :  { %553 = vmatpush.msra.mxu1 %v1145_v20  ;;  %311 = vmatpush.msrb.mxu2 %v1154_v22 }
  0x2d   :  { %400 = vmatpush.msra.mxu3 %v1084_v0  ;;  %672 = vmatpush.msra.mxu0 %v1117_v11 }
  0x2e   :  { %312 = vmatpush.msrb.mxu2 %v1159_v24  ;;  %692 = vmatpush.msrb.mxu1 %v1084_v0 }
  0x2f   :  { %401 = vmatpush.msra.mxu3 %v1086_v1  ;;  %673 = vmatpush.msra.mxu0 %v1120_v12 }
  0x30   :  { %313 = vmatpush.msrb.mxu2 %v1163_v25  ;;  %693 = vmatpush.msrb.mxu1 %v1086_v1 }
  0x31   :  { %402 = vmatpush.msra.mxu3 %v1095_v4  ;;  %674 = vmatpush.msra.mxu0 %v1131_v15 }
  0x32   :  { %314 = vmatpush.msrb.mxu2 %v1169_v26  ;;  %694 = vmatpush.msrb.mxu1 %v1095_v4 }
  0x33   :  { %403 = vmatpush.msra.mxu3 %v1101_v6  ;;  %675 = vmatpush.msra.mxu0 %v1143_v19 }
  0x34   :  { %380 = vmatpush.msra.mxu2 %v1117_v11  ;;  %695 = vmatpush.msrb.mxu1 %v1101_v6 }
  0x35   :  { %404 = vmatpush.msra.mxu3 %v1112_v9  ;;  %676 = vmatpush.msra.mxu0 %v1154_v22 }
  0x36   :  { %381 = vmatpush.msra.mxu2 %v1120_v12  ;;  %696 = vmatpush.msrb.mxu1 %v1112_v9 }
  0x37   :  { %405 = vmatpush.msra.mxu3 %v1122_v13  ;;  %677 = vmatpush.msra.mxu0 %v1159_v24 }
  0x38   :  { %382 = vmatpush.msra.mxu2 %v1131_v15  ;;  %697 = vmatpush.msrb.mxu1 %v1122_v13 }
  0x39   :  { %406 = vmatpush.msra.mxu3 %v1133_v16  ;;  %678 = vmatpush.msra.mxu0 %v1163_v25 }
  0x3a   :  { %383 = vmatpush.msra.mxu2 %v1143_v19  ;;  %698 = vmatpush.msrb.mxu1 %v1133_v16 }
  0x3b   :  { %407 = vmatpush.msra.mxu3 %v1145_v20  ;;  %679 = vmatpush.msra.mxu0 %v1169_v26 }
  0x3c   :  { %384 = vmatpush.msra.mxu2 %v1154_v22  ;;  %699 = vmatpush.msrb.mxu1 %v1145_v20 }
  0x3d   :  { %864 = vmatmul.msk.f32.gmra.mxu0 %vm78_vm0, %v57_v49  ;;  %872 = vmatmul.msk.f32.gmra.mxu1 %vm78_vm0, %v57_v49 }
  0x3e   :  { %385 = vmatpush.msra.mxu2 %v1159_v24 }
  0x40   :  { %386 = vmatpush.msra.mxu2 %v1163_v25 }
  0x42   :  { %387 = vmatpush.msra.mxu2 %v1169_v26 }
  0x45   :  { %865 = vmatmul.msk.f32.gmra.mxu0 %vm78_vm0, %v58_v21  ;;  %873 = vmatmul.msk.f32.gmra.mxu1 %vm78_vm0, %v58_v21 }
  0x92   :  { %v1232_v27 = vpop.f32.mrf.mxu1 }
  0x94   :  { %v120_v35 = vpop.f32.mrf.mxu0 }
  0x95   :  { %v121_v37 = vadd.f32 %v120_v35, %v1241_v36 }
  0x9a   :  { %v161_v30 = vpop.f32.mrf.mxu1 }
  0x9b   :  { %v162_v31 = vadd.f32 %v161_v30, %v1237_v29 }
  0x9f   :  { %v263_v32 = vpop.f32.mrf.mxu3 }
  0xa0   :  { %v267_v33 = vadd.f32 %v263_v32, %v162_v31 }
  0xa2   :  { %908 = vtanh.f32 %v267_v33 }
  0xa6   :  { %v243_v38 = vpop.f32.mrf.mxu2 }
  0xa7   :  { %v266_v39 = vadd.f32 %v243_v38, %v121_v37 }
  0xa8   :  { %v909_v34 = vpop.eup %908 }
  0xa9   :  { %276 = vrot.lane.b32.xlu0 %v909_v34, %s1041_s30  ;;  %910 = vtanh.f32 %v266_v39  ;;  %v271_v50 = vmul.f32 0.5, %v909_v34 }
  0xab   :  { %v273_v51 = vadd.f32 0.5, %v271_v50 }
  0xaf   :  { %v911_v40 = vpop.eup %910 }
  0xb0   :  { %v270_v41 = vmul.f32 0.5, %v911_v40 }
  0xb2   :  { %v272_v42 = vadd.f32 0.5, %v270_v41 }
  0xb4   :  { %v274_v45 = vmul.f32 0.0, %v272_v42 }
  0xba   :  { %v164_v54 = vpop.f32.mrf.mxu1  ;;  %v123_v59 = vpop.f32.mrf.mxu0 }
  0xbb   :  { %v165_v55 = vadd.f32 %v164_v54, %v1237_v29  ;;  %v124_v60 = vadd.f32 %v123_v59, %v1241_v36 }
  0xc2   :  { %v167_v32 = vpop.f32.mrf.mxu1  ;;  %v126_v38 = vpop.f32.mrf.mxu0 }
  0xc3   :  { %v168_v33 = vadd.f32 %v167_v32, %v1237_v29  ;;  %v127_v39 = vadd.f32 %v126_v38, %v1241_v36 }
 0x11b   :  { %v277_v43 = vpop.permute.xlu0 %276 }
 0x11c   :  { %v279_v44 = vmul.f32 %v277_v43, %v272_v42 }
 0x11e   :  { %281 = vrot.lane.b32.xlu0 %v279_v44, %s1041_s30 }
 0x190   :  { %v282_v46 = vpop.permute.xlu0 %281 }
 0x191   :  { %v284_v47 = vadd.f32 %v282_v46, %v274_v45 }
 0x193   :  { %912 = vtanh.f32 %v284_v47 }
 0x199   :  { %v913_v48 = vpop.eup %912 }
 0x19a   :  { %287 = vrot.lane.b32.xlu1 %v913_v48, %s1041_s30 }
 0x20c   :  { %v288_v52 = vpop.permute.xlu1 %287 }
 0x20d   :  { %v290_v53 = vmul.f32 %v288_v52, %v273_v51  ;;  %v59_v51 = vld [vmem:[%s1386_s0 + $0x18] sm:$0xff] }
 0x20e   :  { %866 = vmatmul.msk.f32.gmra.mxu0 %vm78_vm0, %v59_v51  ;;  %874 = vmatmul.msk.f32.gmra.mxu1 %vm78_vm0, %v59_v51 }
 0x20f   :  { %879 = vmatmul.msk.f32.vlgmr.msrb.gmra.mxu2 %vm222_vm1, %v290_v53  ;;  %880 = vmatmul.msk.f32.vlgmr.msrb.gmra.mxu3 %vm222_vm1, %v290_v53 }
 0x210   :  { %453 = vmatpush.msrb.mxu2 %v1117_v11  ;;  %473 = vmatpush.msrb.mxu3 %v1084_v0 }
 0x212   :  { %454 = vmatpush.msrb.mxu2 %v1120_v12  ;;  %474 = vmatpush.msrb.mxu3 %v1086_v1 }
 0x214   :  { %455 = vmatpush.msrb.mxu2 %v1131_v15  ;;  %475 = vmatpush.msrb.mxu3 %v1095_v4 }
 0x216   :  { %456 = vmatpush.msrb.mxu2 %v1143_v19  ;;  %476 = vmatpush.msrb.mxu3 %v1101_v6 }
 0x218   :  { %457 = vmatpush.msrb.mxu2 %v1154_v22  ;;  %477 = vmatpush.msrb.mxu3 %v1112_v9 }
 0x21a   :  { %458 = vmatpush.msrb.mxu2 %v1159_v24  ;;  %478 = vmatpush.msrb.mxu3 %v1122_v13 }
 0x21c   :  { %459 = vmatpush.msrb.mxu2 %v1163_v25  ;;  %479 = vmatpush.msrb.mxu3 %v1133_v16 }
 0x21e   :  { %460 = vmatpush.msrb.mxu2 %v1169_v26  ;;  %480 = vmatpush.msrb.mxu3 %v1145_v20 }
 0x292   :  { %v336_v56 = vpop.f32.mrf.mxu3  ;;  %v316_v61 = vpop.f32.mrf.mxu2 }
 0x293   :  { %v340_v57 = vadd.f32 %v336_v56, %v165_v55  ;;  %v339_v62 = vadd.f32 %v316_v61, %v124_v60  ;;  %v62_v56 = vld [vmem:[%s1386_s0 + $0x30] sm:$0xff] }
 0x295   :  { %914 = vtanh.f32 %v340_v57 }
 0x296   :  { %916 = vtanh.f32 %v339_v62 }
 0x29b   :  { %v915_v58 = vpop.eup %914 }
 0x29c   :  { %349 = vrot.lane.b32.xlu1 %v915_v58, %s1041_s30  ;;  %v917_v63 = vpop.eup %916  ;;  %v344_v23 = vmul.f32 0.5, %v915_v58 }
 0x29d   :  { %v343_v2 = vmul.f32 0.5, %v917_v63 }
 0x29e   :  { %v346_v28 = vadd.f32 0.5, %v344_v23 }
 0x29f   :  { %v345_v3 = vadd.f32 0.5, %v343_v2 }
 0x2a1   :  { %v347_v10 = vmul.f32 %v345_v3, %v284_v47 }
 0x30e   :  { %v350_v5 = vpop.permute.xlu1 %349 }
 0x30f   :  { %v352_v7 = vmul.f32 %v350_v5, %v345_v3 }
 0x311   :  { %354 = vrot.lane.b32.xlu2 %v352_v7, %s1041_s30 }
 0x36b   :  { %v355_v14 = vpop.permute.xlu2 %354 }
 0x36c   :  { %v357_v17 = vadd.f32 %v355_v14, %v347_v10 }
 0x36e   :  { %918 = vtanh.f32 %v357_v17 }
 0x374   :  { %v919_v18 = vpop.eup %918 }
 0x375   :  { %360 = vrot.lane.b32.xlu2 %v919_v18, %s1041_s30 }
 0x3cf   :  { %v361_v30 = vpop.permute.xlu2 %360 }
 0x3d0   :  { %v363_v31 = vmul.f32 %v361_v30, %v346_v28 }
 0x3d2   :  { %881 = vmatmul.msk.f32.vlgmr.msra.gmra.mxu2 %vm222_vm1, %v363_v31  ;;  %882 = vmatmul.msk.f32.vlgmr.msra.gmra.mxu3 %vm222_vm1, %v363_v31 }
 0x3d3   :  { %599 = vmatpush.msra.mxu2 %v1117_v11  ;;  %619 = vmatpush.msra.mxu3 %v1084_v0 }
 0x3d5   :  { %600 = vmatpush.msra.mxu2 %v1120_v12  ;;  %620 = vmatpush.msra.mxu3 %v1086_v1 }
 0x3d7   :  { %601 = vmatpush.msra.mxu2 %v1131_v15  ;;  %621 = vmatpush.msra.mxu3 %v1095_v4 }
 0x3d9   :  { %602 = vmatpush.msra.mxu2 %v1143_v19  ;;  %622 = vmatpush.msra.mxu3 %v1101_v6 }
 0x3db   :  { %603 = vmatpush.msra.mxu2 %v1154_v22  ;;  %623 = vmatpush.msra.mxu3 %v1112_v9 }
 0x3dd   :  { %604 = vmatpush.msra.mxu2 %v1159_v24  ;;  %624 = vmatpush.msra.mxu3 %v1122_v13 }
 0x3df   :  { %605 = vmatpush.msra.mxu2 %v1163_v25  ;;  %625 = vmatpush.msra.mxu3 %v1133_v16 }
 0x3e1   :  { %606 = vmatpush.msra.mxu2 %v1169_v26  ;;  %626 = vmatpush.msra.mxu3 %v1145_v20 }
 0x455   :  { %v409_v34 = vpop.f32.mrf.mxu3  ;;  %v389_v40 = vpop.f32.mrf.mxu2 }
 0x456   :  { %v413_v35 = vadd.f32 %v409_v34, %v168_v33  ;;  %v412_v41 = vadd.f32 %v389_v40, %v127_v39 }
 0x458   :  { %920 = vtanh.f32 %v413_v35 }
 0x459   :  { %922 = vtanh.f32 %v412_v41 }
 0x45e   :  { %v921_v37 = vpop.eup %920 }
 0x45f   :  { %422 = vrot.lane.b32.xlu0 %v921_v37, %s1041_s30  ;;  %v923_v42 = vpop.eup %922  ;;  %v417_v52 = vmul.f32 0.5, %v921_v37 }
 0x460   :  { %v416_v43 = vmul.f32 0.5, %v923_v42 }
 0x461   :  { %v419_v53 = vadd.f32 0.5, %v417_v52 }
 0x462   :  { %v418_v44 = vadd.f32 0.5, %v416_v43 }
 0x464   :  { %v420_v47 = vmul.f32 %v418_v44, %v357_v17 }
 0x4d1   :  { %v423_v45 = vpop.permute.xlu0 %422 }
 0x4d2   :  { %v425_v46 = vmul.f32 %v423_v45, %v418_v44 }
 0x4d4   :  { %427 = vrot.lane.b32.xlu1 %v425_v46, %s1041_s30 }
 0x546   :  { %v428_v48 = vpop.permute.xlu1 %427 }
 0x547   :  { %v430_v49 = vadd.f32 %v428_v48, %v420_v47 }
 0x549   :  { %924 = vtanh.f32 %v430_v49 }
 0x54f   :  { %v925_v50 = vpop.eup %924 }
 0x550   :  { %433 = vrot.lane.b32.xlu2 %v925_v50, %s1041_s30 }
 0x5aa   :  { %v434_v54 = vpop.permute.xlu2 %433 }
 0x5ab   :  { %v436_v55 = vmul.f32 %v434_v54, %v419_v53 }
 0x5ad   :  { %883 = vmatmul.msk.f32.vlgmr.msrb.gmra.mxu2 %vm222_vm1, %v436_v55  ;;  %884 = vmatmul.msk.f32.vlgmr.msrb.gmra.mxu3 %vm222_vm1, %v436_v55 }
 0x5ae   :  { %745 = vmatpush.msrb.mxu2 %v1117_v11  ;;  %765 = vmatpush.msrb.mxu3 %v1084_v0  ;;  %v170_v0 = vpop.f32.mrf.mxu1 }
 0x5b0   :  { %746 = vmatpush.msrb.mxu2 %v1120_v12  ;;  %766 = vmatpush.msrb.mxu3 %v1086_v1  ;;  %v171_v1 = vadd.f32 %v170_v0, %v1237_v29 }
 0x5b2   :  { %747 = vmatpush.msrb.mxu2 %v1131_v15  ;;  %767 = vmatpush.msrb.mxu3 %v1095_v4 }
 0x5b4   :  { %748 = vmatpush.msrb.mxu2 %v1143_v19  ;;  %768 = vmatpush.msrb.mxu3 %v1101_v6 }
 0x5b6   :  { %749 = vmatpush.msrb.mxu2 %v1154_v22  ;;  %769 = vmatpush.msrb.mxu3 %v1112_v9  ;;  %v129_v9 = vpop.f32.mrf.mxu0 }
 0x5b7   :  { %v130_v12 = vadd.f32 %v129_v9, %v1241_v36 }
 0x5b8   :  { %750 = vmatpush.msrb.mxu2 %v1159_v24  ;;  %770 = vmatpush.msrb.mxu3 %v1122_v13 }
 0x5ba   :  { %751 = vmatpush.msrb.mxu2 %v1163_v25  ;;  %771 = vmatpush.msrb.mxu3 %v1133_v16  ;;  %v60_v25 = vld [vmem:[%s1386_s0 + $0x20] sm:$0xff] }
 0x5bb   :  { %875 = vmatmul.msk.f32.gmra.mxu1 %vm78_vm0, %v60_v25  ;;  %867 = vmatmul.msk.f32.gmra.mxu0 %vm78_vm0, %v60_v25 }
 0x5bc   :  { %752 = vmatpush.msrb.mxu2 %v1169_v26  ;;  %772 = vmatpush.msrb.mxu3 %v1145_v20  ;;  %v61_v26 = vld [vmem:[%s1386_s0 + $0x28] sm:$0xff] }
 0x5c3   :  { %876 = vmatmul.msk.f32.gmra.mxu1 %vm78_vm0, %v61_v26  ;;  %868 = vmatmul.msk.f32.gmra.mxu0 %vm78_vm0, %v61_v26 }
 0x5cb   :  { %877 = vmatmul.msk.f32.gmra.mxu1 %vm78_vm0, %v62_v56  ;;  %869 = vmatmul.msk.f32.gmra.mxu0 %vm78_vm0, %v62_v56 }
 0x5d3   :  { %878 = vmatmul.msk.f32.gmra.mxu1 %vm78_vm0, %v1110_v8 }
 0x630   :  { %v482_v4 = vpop.f32.mrf.mxu3  ;;  %v462_v13 = vpop.f32.mrf.mxu2 }
 0x631   :  { %v486_v6 = vadd.f32 %v482_v4, %v171_v1  ;;  %v485_v15 = vadd.f32 %v462_v13, %v130_v12 }
 0x633   :  { %926 = vtanh.f32 %v486_v6 }
 0x634   :  { %928 = vtanh.f32 %v485_v15 }
 0x638   :  { %v173_v3 = vpop.f32.mrf.mxu1  ;;  %v132_v21 = vpop.f32.mrf.mxu0 }
 0x639   :  { %v927_v11 = vpop.eup %926  ;;  %v174_v14 = vadd.f32 %v173_v3, %v1237_v29  ;;  %v133_v30 = vadd.f32 %v132_v21, %v1241_v36 }
 0x63a   :  { %495 = vrot.lane.b32.xlu0 %v927_v11, %s1041_s30  ;;  %v929_v16 = vpop.eup %928  ;;  %v490_v61 = vmul.f32 0.5, %v927_v11 }
 0x63b   :  { %v489_v19 = vmul.f32 0.5, %v929_v16 }
 0x63c   :  { %v492_v62 = vadd.f32 0.5, %v490_v61 }
 0x63d   :  { %v491_v22 = vadd.f32 0.5, %v489_v19 }
 0x63f   :  { %v493_v57 = vmul.f32 %v491_v22, %v430_v49 }
 0x640   :  { %v176_v5 = vpop.f32.mrf.mxu1  ;;  %v135_v23 = vpop.f32.mrf.mxu0 }
 0x641   :  { %v177_v47 = vadd.f32 %v176_v5, %v1237_v29  ;;  %v136_v52 = vadd.f32 %v135_v23, %v1241_v36 }
 0x648   :  { %v179_v7 = vpop.f32.mrf.mxu1  ;;  %v138_v28 = vpop.f32.mrf.mxu0 }
 0x649   :  { %v139_v56 = vadd.f32 %v138_v28, %v1241_v36 }
 0x650   :  { %v1349_v10 = vpop.f32.mrf.mxu1 }
 0x6ac   :  { %v496_v24 = vpop.permute.xlu0 %495 }
 0x6ad   :  { %v498_v20 = vmul.f32 %v496_v24, %v491_v22  ;;  %v180_v22 = vadd.f32 %v179_v7, %v1237_v29 }
 0x6af   :  { %500 = vrot.lane.b32.xlu1 %v498_v20, %s1041_s30 }
 0x721   :  { %v501_v58 = vpop.permute.xlu1 %500 }
 0x722   :  { %v503_v59 = vadd.f32 %v501_v58, %v493_v57 }
 0x724   :  { %930 = vtanh.f32 %v503_v59 }
 0x72a   :  { %v931_v60 = vpop.eup %930 }
 0x72b   :  { %506 = vrot.lane.b32.xlu2 %v931_v60, %s1041_s30 }
 0x785   :  { %v507_v63 = vpop.permute.xlu2 %506 }
 0x786   :  { %v509_v2 = vmul.f32 %v507_v63, %v492_v62 }
 0x788   :  { %885 = vmatmul.msk.f32.vlgmr.msrb.gmra.mxu0 %vm222_vm1, %v509_v2  ;;  %886 = vmatmul.msk.f32.vlgmr.msra.gmra.mxu1 %vm222_vm1, %v509_v2 }
 0x805   :  { %v555_v17 = vpop.f32.mrf.mxu1  ;;  %v535_v31 = vpop.f32.mrf.mxu0 }
 0x806   :  { %v559_v8 = vadd.f32 %v555_v17, %v174_v14  ;;  %v558_v32 = vadd.f32 %v535_v31, %v133_v30  ;;  %v142_v31 = vadd.f32 %v1232_v27, %v1241_v36  ;;  %v803_v27 = vld [vmem:[#allocation6 + $0x8] sm:$0xff] }
 0x808   :  { %932 = vtanh.f32 %v559_v8 }
 0x809   :  { %934 = vtanh.f32 %v558_v32 }
 0x80e   :  { %v933_v18 = vpop.eup %932 }
 0x80f   :  { %568 = vrot.lane.b32.xlu0 %v933_v18, %s1041_s30  ;;  %v935_v33 = vpop.eup %934  ;;  %v563_v43 = vmul.f32 0.5, %v933_v18  ;;  %v183_v18 = vadd.f32 %v1349_v10, %v1237_v29  ;;  %v809_v29 = vld [vmem:[#allocation6 + $0x38] sm:$0xff]  ;;  %v808_v10 = vld [vmem:[#allocation6 + $0x30] sm:$0xff] }
 0x810   :  { %v562_v34 = vmul.f32 0.5, %v935_v33  ;;  %825 = vmatpush.msrb.mxu0 %v809_v29 }
 0x811   :  { %v565_v44 = vadd.f32 0.5, %v563_v43 }
 0x812   :  { %v564_v35 = vadd.f32 0.5, %v562_v34  ;;  %826 = vmatpush.msrb.mxu0 %v808_v10 }
 0x814   :  { %v566_v39 = vmul.f32 %v564_v35, %v503_v59 }
 0x881   :  { %v569_v37 = vpop.permute.xlu0 %568 }
 0x882   :  { %v571_v38 = vmul.f32 %v569_v37, %v564_v35 }
 0x884   :  { %573 = vrot.lane.b32.xlu1 %v571_v38, %s1041_s30 }
 0x8f6   :  { %v574_v40 = vpop.permute.xlu1 %573 }
 0x8f7   :  { %v576_v41 = vadd.f32 %v574_v40, %v566_v39  ;;  %v807_v39 = vld [vmem:[#allocation6 + $0x28] sm:$0xff]  ;;  %v806_v40 = vld [vmem:[#allocation6 + $0x20] sm:$0xff] }
 0x8f8   :  { %827 = vmatpush.msrb.mxu0 %v807_v39 }
 0x8f9   :  { %936 = vtanh.f32 %v576_v41 }
 0x8fa   :  { %828 = vmatpush.msrb.mxu0 %v806_v40 }
 0x8ff   :  { %v937_v42 = vpop.eup %936 }
 0x900   :  { %579 = vrot.lane.b32.xlu2 %v937_v42, %s1041_s30  ;;  %v804_v42 = vld [vmem:[#allocation6 + $0x10] sm:$0xff] }
 0x95a   :  { %v580_v45 = vpop.permute.xlu2 %579 }
 0x95b   :  { %v582_v46 = vmul.f32 %v580_v45, %v565_v44 }
 0x95d   :  { %887 = vmatmul.msk.f32.vlgmr.msra.gmra.mxu2 %vm222_vm1, %v582_v46  ;;  %888 = vmatmul.msk.f32.vlgmr.msra.gmra.mxu3 %vm222_vm1, %v582_v46  ;;  %v802_v46 = vld [vmem:[#allocation6] sm:$0xff] }
 0x9e0   :  { %v628_v48 = vpop.f32.mrf.mxu3  ;;  %v608_v51 = vpop.f32.mrf.mxu2 }
 0x9e1   :  { %v632_v49 = vadd.f32 %v628_v48, %v177_v47  ;;  %v631_v53 = vadd.f32 %v608_v51, %v136_v52  ;;  %v907_v51 = vld [vmem:[%s1391_s5] ss:$0 sm:$0xff] }
 0x9e3   :  { %938 = vtanh.f32 %v632_v49 }
 0x9e4   :  { %940 = vtanh.f32 %v631_v53 }
 0x9e9   :  { %v939_v50 = vpop.eup %938 }
 0x9ea   :  { %641 = vrot.lane.b32.xlu0 %v939_v50, %s1041_s30  ;;  %v941_v54 = vpop.eup %940  ;;  %v636_v13 = vmul.f32 0.5, %v939_v50 }
 0x9eb   :  { %v635_v55 = vmul.f32 0.5, %v941_v54 }
 0x9ec   :  { %v638_v15 = vadd.f32 0.5, %v636_v13 }
 0x9ed   :  { %v637_v0 = vadd.f32 0.5, %v635_v55 }
 0x9ef   :  { %v639_v6 = vmul.f32 %v637_v0, %v576_v41  ;;  %v805_v41 = vld [vmem:[#allocation6 + $0x18] sm:$0xff] }
 0x9f0   :  { %829 = vmatpush.msrb.mxu0 %v805_v41 }
 0x9f2   :  { %830 = vmatpush.msrb.mxu0 %v804_v42 }
 0x9f4   :  { %831 = vmatpush.msrb.mxu0 %v803_v27 }
 0x9f6   :  { %832 = vmatpush.msrb.mxu0 %v802_v46 }
 0xa5c   :  { %v642_v1 = vpop.permute.xlu0 %641 }
 0xa5d   :  { %v644_v4 = vmul.f32 %v642_v1, %v637_v0 }
 0xa5f   :  { %646 = vrot.lane.b32.xlu1 %v644_v4, %s1041_s30 }
 0xad1   :  { %v647_v11 = vpop.permute.xlu1 %646 }
 0xad2   :  { %v649_v9 = vadd.f32 %v647_v11, %v639_v6 }
 0xad4   :  { %942 = vtanh.f32 %v649_v9 }
 0xada   :  { %v943_v12 = vpop.eup %942 }
 0xadb   :  { %652 = vrot.lane.b32.xlu2 %v943_v12, %s1041_s30 }
 0xb35   :  { %v653_v16 = vpop.permute.xlu2 %652 }
 0xb36   :  { %v655_v19 = vmul.f32 %v653_v16, %v638_v15 }
 0xb38   :  { %889 = vmatmul.msk.f32.vlgmr.msra.gmra.mxu0 %vm222_vm1, %v655_v19  ;;  %890 = vmatmul.msk.f32.vlgmr.msrb.gmra.mxu1 %vm222_vm1, %v655_v19 }
 0xbb5   :  { %v701_v24 = vpop.f32.mrf.mxu1  ;;  %v681_v26 = vpop.f32.mrf.mxu0 }
 0xbb6   :  { %v705_v20 = vadd.f32 %v701_v24, %v180_v22  ;;  %v704_v57 = vadd.f32 %v681_v26, %v139_v56 }
 0xbb8   :  { %944 = vtanh.f32 %v705_v20 }
 0xbb9   :  { %946 = vtanh.f32 %v704_v57 }
 0xbbe   :  { %v945_v25 = vpop.eup %944 }
 0xbbf   :  { %714 = vrot.lane.b32.xlu0 %v945_v25, %s1041_s30  ;;  %v947_v58 = vpop.eup %946  ;;  %v709_v7 = vmul.f32 0.5, %v945_v25 }
 0xbc0   :  { %v708_v59 = vmul.f32 0.5, %v947_v58 }
 0xbc1   :  { %v711_v14 = vadd.f32 0.5, %v709_v7 }
 0xbc2   :  { %v710_v60 = vadd.f32 0.5, %v708_v59 }
 0xbc4   :  { %v712_v63 = vmul.f32 %v710_v60, %v649_v9 }
 0xc31   :  { %v715_v61 = vpop.permute.xlu0 %714 }
 0xc32   :  { %v717_v62 = vmul.f32 %v715_v61, %v710_v60 }
 0xc34   :  { %719 = vrot.lane.b32.xlu1 %v717_v62, %s1041_s30 }
 0xca6   :  { %v720_v2 = vpop.permute.xlu1 %719 }
 0xca7   :  { %v722_v3 = vadd.f32 %v720_v2, %v712_v63 }
 0xca9   :  { %948 = vtanh.f32 %v722_v3 }
 0xcaf   :  { %v949_v5 = vpop.eup %948 }
 0xcb0   :  { %725 = vrot.lane.b32.xlu2 %v949_v5, %s1041_s30 }
 0xd0a   :  { %v726_v17 = vpop.permute.xlu2 %725 }
 0xd0b   :  { %v728_v8 = vmul.f32 %v726_v17, %v711_v14 }
 0xd0d   :  { %891 = vmatmul.msk.f32.vlgmr.msrb.gmra.mxu2 %vm222_vm1, %v728_v8  ;;  %892 = vmatmul.msk.f32.vlgmr.msrb.gmra.mxu3 %vm222_vm1, %v728_v8 }
 0xd90   :  { %v774_v21 = vpop.f32.mrf.mxu3  ;;  %v754_v30 = vpop.f32.mrf.mxu2 }
 0xd91   :  { %v778_v23 = vadd.f32 %v774_v21, %v183_v18  ;;  %v777_v32 = vadd.f32 %v754_v30, %v142_v31 }
 0xd93   :  { %950 = vtanh.f32 %v778_v23 }
 0xd94   :  { %952 = vtanh.f32 %v777_v32 }
 0xd99   :  { %v951_v28 = vpop.eup %950 }
 0xd9a   :  { %787 = vrot.lane.b32.xlu0 %v951_v28, %s1041_s30  ;;  %v953_v33 = vpop.eup %952  ;;  %v782_v47 = vmul.f32 0.5, %v951_v28 }
 0xd9b   :  { %v781_v34 = vmul.f32 0.5, %v953_v33 }
 0xd9c   :  { %v784_v48 = vadd.f32 0.5, %v782_v47 }
 0xd9d   :  { %v783_v35 = vadd.f32 0.5, %v781_v34 }
 0xd9f   :  { %v785_v36 = vmul.f32 %v783_v35, %v722_v3 }
 0xe0c   :  { %v788_v37 = vpop.permute.xlu0 %787 }
 0xe0d   :  { %v790_v38 = vmul.f32 %v788_v37, %v783_v35 }
 0xe0f   :  { %792 = vrot.lane.b32.xlu1 %v790_v38, %s1041_s30 }
 0xe81   :  { %v793_v43 = vpop.permute.xlu1 %792 }
 0xe82   :  { %v795_v44 = vadd.f32 %v793_v43, %v785_v36 }
 0xe84   :  { %954 = vtanh.f32 %v795_v44 }
 0xe8a   :  { %v955_v45 = vpop.eup %954 }
 0xe8b   :  { %798 = vrot.lane.b32.xlu2 %v955_v45, %s1041_s30 }
 0xee5   :  { %v799_v49 = vpop.permute.xlu2 %798 }
 0xee6   :  { %v801_v50 = vmul.f32 %v799_v49, %v784_v48 }
 0xee8   :  { %893 = vmatmul.msk.f32.vlgmr.msrb.gmra.mxu0 %vm222_vm1, %v801_v50 }
 0xf65   :  { %v834_v52 = vpop.f32.mrf.mxu0 }
 0xf66   :  { %v835_v53 = vadd.f32 %v907_v51, %v834_v52 }
 0xf68   :  { %837 = vst [vmem:[#allocation8] sm:$0xff] %v835_v53 }
 0xf69   :  { %848 = dma.vmem_to_hbm [thread:$0]  %s844_s18, 128, %s846_s21, [#allocation5]  }
 0xf6a   :  { %1032 = dma.done.wait [#allocation5], 128  }
 0xf6b   :  { %1033 = vsyncadd [#allocation5], 4294967168 }
 0xf6c   :  { %853 = vsyncpa [#allocation4], 1 }
 0xf6d   :  { %854 = vsyncpa [#allocation7], 1 }
 0xf6e   :  { %855 = vsyncpa [#allocation5], 1 }

</bundles_post_ra>
